<compile_context>
chip_gen: v6e
topology: v6e:2x2x1
jax: 0.10.0
libtpu: 0.0.40
codegen_flags: <defaults>
</compile_context>

<pallas_src>
import functools

import jax
import jax.numpy as jnp
from jax.experimental import pallas as pl
from jax.experimental.pallas import tpu as pltpu

LANE = 128  # TPU lane width


def _round_up(n, m):
    return ((n + m - 1) // m) * m


def mlp_kernel(x_ref, w1_ref, b1_ref, w2_ref, b2_ref, o_ref):
    # fc1: MXU matmul (bf16 in, f32 accumulate); bias + ReLU on the VPU in f32.
    h = jnp.dot(x_ref[...], w1_ref[...], preferred_element_type=jnp.float32)
    h = jnp.maximum(h + b1_ref[...], 0.0)
    # Single downcast of activations to the matmul dtype for fc2.
    h = h.astype(w2_ref.dtype)
    # fc2: MXU matmul; bias + ReLU in f32; lane-dense (Cp = 128) store.
    y = jnp.dot(h, w2_ref[...], preferred_element_type=jnp.float32)
    y = jnp.maximum(y + b2_ref[...], 0.0)
    o_ref[...] = y.astype(o_ref.dtype)


def prepare_params(w1, b1, w2, b2, *, compute_dtype=jnp.bfloat16):
    """Pad/cast fc1+fc2 parameters ONCE (hoisted out of the per-call path).

    w1: (D, H), b1: (1, H), w2: (H, C), b2: (1, C)  — weights stored (in, out),
    i.e. transposed vs. PyTorch's (out, in) layout, so jnp.dot maps onto the MXU.

    Zero-padding of H/C is exact for Linear + bias + ReLU: padded hidden units
    get bias 0 -> ReLU 0 -> contribute 0 to fc2; padded output columns are
    sliced off after the kernel.
    """
    D, H = w1.shape
    C = w2.shape[1]
    Hp = _round_up(H, LANE)
    Cp = _round_up(C, LANE)
    w1p = jnp.zeros((D, Hp), compute_dtype).at[:, :H].set(w1.astype(compute_dtype))
    b1p = jnp.zeros((1, Hp), jnp.float32).at[:, :H].set(b1.astype(jnp.float32))
    w2p = jnp.zeros((Hp, Cp), compute_dtype).at[:H, :C].set(w2.astype(compute_dtype))
    b2p = jnp.zeros((1, Cp), jnp.float32).at[:, :C].set(b2.astype(jnp.float32))
    return (w1p, b1p, w2p, b2p)


def _default_block_b(B):
    # Prefer two batch tiles when B is big enough so the "parallel" grid axis
    # can shard across v7x's two TensorCores; one tile otherwise. Multiple of
    # 16 for bf16 sublane packing; capped so VMEM stays trivial.
    if B >= 32:
        blk = _round_up((B + 1) // 2, 16)
    else:
        blk = _round_up(max(B, 1), 16)
    return min(max(blk, 16), 512)


def n_layered_network_forward(x, params, *, n_classes, block_b=None,
                              compute_dtype=jnp.bfloat16):
    """x: (B, D) f32; params = prepare_params(...) output. Returns (B, n_classes) f32."""
    w1p, b1p, w2p, b2p = params
    B, D = x.shape
    Hp = w1p.shape[1]
    Cp = w2p.shape[1]

    blk = _default_block_b(B) if block_b is None else _round_up(max(int(block_b), 16), 16)
    Bp = _round_up(B, blk)

    # Single cast of x to the MXU dtype; NO feature-dim padding (block last dim
    # equals the full array dim, Mosaic pads K internally). Batch rows padded
    # only if blk doesn't divide B (extra rows are sliced off below).
    xb = x.astype(compute_dtype)
    if Bp != B:
        xb = jnp.zeros((Bp, D), compute_dtype).at[:B, :].set(xb)

    grid = (Bp // blk,)
    out_padded = pl.pallas_call(
        mlp_kernel,
        out_shape=jax.ShapeDtypeStruct((Bp, Cp), jnp.float32),
        grid=grid,
        in_specs=[
            pl.BlockSpec((blk, D), lambda i: (i, 0)),   # x: tiled over batch
            pl.BlockSpec((D, Hp), lambda i: (0, 0)),    # w1: VMEM-resident
            pl.BlockSpec((1, Hp), lambda i: (0, 0)),    # b1: VMEM-resident
            pl.BlockSpec((Hp, Cp), lambda i: (0, 0)),   # w2: VMEM-resident
            pl.BlockSpec((1, Cp), lambda i: (0, 0)),    # b2: VMEM-resident
        ],
        out_specs=pl.BlockSpec((blk, Cp), lambda i: (i, 0)),
        compiler_params=pltpu.CompilerParams(
            dimension_semantics=("parallel",)),
    )(xb, w1p, b1p, w2p, b2p)

    # Slice off batch/class padding to return the PyTorch-shaped result.
    return out_padded[:B, :n_classes]


def init_linear(key, fan_in, fan_out, dtype=jnp.float32):
    """Deterministic PyTorch-style Linear init: U(-1/sqrt(fan_in), 1/sqrt(fan_in)).
    Returns weight in (in, out) layout (transposed vs. PyTorch's (out, in))."""
    kw, kb = jax.random.split(key)
    bound = 1.0 / (fan_in ** 0.5)
    w = jax.random.uniform(kw, (fan_in, fan_out), dtype, -bound, bound)
    b = jax.random.uniform(kb, (1, fan_out), dtype, -bound, bound)
    return w, b


if __name__ == "__main__":
    n_classes = 2
    input_size = 32
    hidden = int(input_size * 1.5)   # 48
    batch = 256

    key = jax.random.PRNGKey(0)
    kx, k1, k2 = jax.random.split(key, 3)

    x = jax.random.normal(kx, (batch, input_size), jnp.float32)
    w1, b1 = init_linear(k1, input_size, hidden)     # fc1
    w2, b2 = init_linear(k2, hidden, n_classes)      # fc2

    # Pad/cast parameters ONCE; reuse across every forward call.
    params = jax.block_until_ready(prepare_params(w1, b1, w2, b2))

    fwd = jax.jit(functools.partial(n_layered_network_forward,
                                    n_classes=n_classes))
    out = jax.block_until_ready(fwd(x, params))

    # Reference in plain JAX at matching precision (bf16 matmul inputs,
    # f32 accumulation / bias / ReLU).
    xb = x.astype(jnp.bfloat16)
    w1b = w1.astype(jnp.bfloat16)
    w2b = w2.astype(jnp.bfloat16)
    h_ref = jnp.maximum(
        jnp.dot(xb, w1b, preferred_element_type=jnp.float32) + b1, 0.0)
    ref = jnp.maximum(
        jnp.dot(h_ref.astype(jnp.bfloat16), w2b,
                preferred_element_type=jnp.float32) + b2, 0.0)

    assert out.shape == (batch, n_classes)
    assert out.dtype == jnp.float32
    assert jnp.allclose(out, ref, atol=1e-4, rtol=1e-4)

    print("KERNEL_OK")
</pallas_src>

<mosaic_0001>
module attributes {stable_mosaic.version = 11 : i64} {
  func.func @mlp_kernel(%arg0: i32, %arg1: memref<128x32xbf16, #tpu.memory_space<vmem>>, %arg2: memref<32x128xbf16, #tpu.memory_space<vmem>>, %arg3: memref<1x128xf32, #tpu.memory_space<vmem>>, %arg4: memref<128x128xbf16, #tpu.memory_space<vmem>>, %arg5: memref<1x128xf32, #tpu.memory_space<vmem>>, %arg6: memref<128x128xf32, #tpu.memory_space<vmem>>) attributes {dimension_semantics = [#tpu.dimension_semantics<parallel>], iteration_bounds = array<i64: 2>, scalar_prefetch = 0 : i64, scratch_operands = 0 : i64, tpu.core_type = #tpu.core_type<tc>, window_params = [{transform_indices = @transform_0, window_bounds = array<i64: 128, 32>}, {pipeline_mode = #tpu.pipeline_mode<synchronous>, transform_indices = @transform_1, window_bounds = array<i64: 32, 128>}, {pipeline_mode = #tpu.pipeline_mode<synchronous>, transform_indices = @transform_2, window_bounds = array<i64: 1, 128>}, {pipeline_mode = #tpu.pipeline_mode<synchronous>, transform_indices = @transform_3, window_bounds = array<i64: 128, 128>}, {pipeline_mode = #tpu.pipeline_mode<synchronous>, transform_indices = @transform_4, window_bounds = array<i64: 1, 128>}, {transform_indices = @transform_5, window_bounds = array<i64: 128, 128>}]} {
    %c0 = arith.constant 0 : index
    %c0_0 = arith.constant 0 : index
    %0 = vector.load %arg1[%c0, %c0_0] : memref<128x32xbf16, #tpu.memory_space<vmem>>, vector<128x32xbf16>
    %c0_1 = arith.constant 0 : index
    %c0_2 = arith.constant 0 : index
    %1 = vector.load %arg2[%c0_1, %c0_2] : memref<32x128xbf16, #tpu.memory_space<vmem>>, vector<32x128xbf16>
    %cst = arith.constant dense<0.000000e+00> : vector<128x128xf32>
    %2 = tpu.matmul %0, %1, %cst {dimension_numbers = #tpu.dot_dimension_numbers<[1], [0], [0], [1], [0, 0, 1, 1], [], []>} : vector<128x32xbf16>, vector<32x128xbf16>, vector<128x128xf32> -> vector<128x128xf32>
    %c0_3 = arith.constant 0 : index
    %c0_4 = arith.constant 0 : index
    %3 = vector.load %arg3[%c0_3, %c0_4] : memref<1x128xf32, #tpu.memory_space<vmem>>, vector<1x128xf32>
    %4 = vector.broadcast %3 : vector<1x128xf32> to vector<128x128xf32>
    %5 = arith.addf %2, %4 : vector<128x128xf32>
    %cst_5 = arith.constant 0.000000e+00 : f32
    %6 = vector.broadcast %cst_5 : f32 to vector<128x128xf32>
    %7 = arith.maximumf %5, %6 : vector<128x128xf32>
    %8 = arith.truncf %7 : vector<128x128xf32> to vector<128x128xbf16>
    %c0_6 = arith.constant 0 : index
    %c0_7 = arith.constant 0 : index
    %9 = vector.load %arg4[%c0_6, %c0_7] : memref<128x128xbf16, #tpu.memory_space<vmem>>, vector<128x128xbf16>
    %cst_8 = arith.constant dense<0.000000e+00> : vector<128x128xf32>
    %10 = tpu.matmul %8, %9, %cst_8 {dimension_numbers = #tpu.dot_dimension_numbers<[1], [0], [0], [1], [0, 0, 1, 1], [], []>} : vector<128x128xbf16>, vector<128x128xbf16>, vector<128x128xf32> -> vector<128x128xf32>
    %c0_9 = arith.constant 0 : index
    %c0_10 = arith.constant 0 : index
    %11 = vector.load %arg5[%c0_9, %c0_10] : memref<1x128xf32, #tpu.memory_space<vmem>>, vector<1x128xf32>
    %12 = vector.broadcast %11 : vector<1x128xf32> to vector<128x128xf32>
    %13 = arith.addf %10, %12 : vector<128x128xf32>
    %cst_11 = arith.constant 0.000000e+00 : f32
    %14 = vector.broadcast %cst_11 : f32 to vector<128x128xf32>
    %15 = arith.maximumf %13, %14 : vector<128x128xf32>
    %c0_12 = arith.constant 0 : index
    %c0_13 = arith.constant 0 : index
    %16 = vector.load %arg6[%c0_12, %c0_13] : memref<128x128xf32, #tpu.memory_space<vmem>>, vector<128x128xf32>
    tpu.vector_store %arg6[%c0_12, %c0_13], %15 {strides = array<i32>} : memref<128x128xf32, #tpu.memory_space<vmem>>, vector<128x128xf32>,
    return
  }
  func.func @transform_0(%arg0: i32) -> (i32, i32) {
    %c0_i32 = arith.constant 0 : i32
    %c0_i32_0 = arith.constant 0 : i32
    return %arg0, %c0_i32 : i32, i32
  }
  func.func @transform_1(%arg0: i32) -> (i32, i32) {
    %c0_i32 = arith.constant 0 : i32
    %c0_i32_0 = arith.constant 0 : i32
    %c0_i32_1 = arith.constant 0 : i32
    return %c0_i32, %c0_i32_0 : i32, i32
  }
  func.func @transform_2(%arg0: i32) -> (i32, i32) {
    %c0_i32 = arith.constant 0 : i32
    %c0_i32_0 = arith.constant 0 : i32
    %c0_i32_1 = arith.constant 0 : i32
    return %c0_i32, %c0_i32_0 : i32, i32
  }
  func.func @transform_3(%arg0: i32) -> (i32, i32) {
    %c0_i32 = arith.constant 0 : i32
    %c0_i32_0 = arith.constant 0 : i32
    %c0_i32_1 = arith.constant 0 : i32
    return %c0_i32, %c0_i32_0 : i32, i32
  }
  func.func @transform_4(%arg0: i32) -> (i32, i32) {
    %c0_i32 = arith.constant 0 : i32
    %c0_i32_0 = arith.constant 0 : i32
    %c0_i32_1 = arith.constant 0 : i32
    return %c0_i32, %c0_i32_0 : i32, i32
  }
  func.func @transform_5(%arg0: i32) -> (i32, i32) {
    %c0_i32 = arith.constant 0 : i32
    %c0_i32_0 = arith.constant 0 : i32
    return %arg0, %c0_i32 : i32, i32
  }
}

</mosaic_0001>

<bundles_post_ra>
// kernel: n_layered_network_forward.1
= control target key start
LH: loop header
LB: loop body
LE: loop exit
PB: predicated region body
PF: predicated region fallthrough
CT: control target
= control target key end

     0   :  { %s907_s18 = smov 0   ;;  %s1018_s0 = inlined_call_operand.vmem [shape: bf16[256,32], index: 0, kind: input, shape index: {}]   ;;  %s1019_s1 = inlined_call_operand.vmem [shape: bf16[32,128], index: 1, kind: input, shape index: {}]   ;;  %s1020_s2 = inlined_call_operand.vmem [shape: f32[1,128], index: 2, kind: input, shape index: {}]   ;;  %s1021_s3 = inlined_call_operand.vmem [shape: bf16[128,128], index: 3, kind: input, shape index: {}]   ;;  %s1022_s4 = inlined_call_operand.vmem [shape: f32[1,128], index: 4, kind: input, shape index: {}]   ;;  %s1023_s5 = inlined_call_operand.vmem [shape: f32[256,128], index: 5, kind: output, shape index: {}]  }
   0x1 LB: > { %s710_s19 = sadd.s32 4294967295, %s875_s18   ;;  %p714_p0 = scmp.ge.s32.totalorder %s875_s18, 1  ;;  %s875_s18 = sphi %s907_s18, %s15_s18  }
   0x2   : > { %p188_p1 = scmp.lt.s32.totalorder %s875_s18, 3 }
   0x4   : > { %p189_p2 = pnand %p714_p0, %p188_p1 }
   0x5   : > { %s715_s22 = sshll.u32 (!%p189_p2), %s710_s19, 4 }
   0x6   : > { %192 = sbr.rel (%p189_p2) target bundleno = 454 (0x1c6), region = 40  ;;  %p217_p3 = scmp.lt.s32.totalorder (!%p189_p2), %s715_s22, 31 }
   0xb   : > { %v851_v0 = vld [vmem:[%s1019_s1 + $0x8] sm:$0xff]   ;;  %v852_v1 = vld [vmem:[%s1019_s1] sm:$0xff]   ;;  %v861_v2 = vld [vmem:[%s1021_s3 + $0x38] sm:$0xff]   ;;  %s1025_s22 = smov (!%p217_p3, %s715_s22), 31  ;;  %vm308_vm0 = vcmask 261120  }
   0xc   : > { %775 = vmatprep.subr.bf16.mxu0 %v851_v0  ;;  %v862_v3 = vld [vmem:[%s1021_s3 + $0x30] sm:$0xff]   ;;  %827 = vmatprep.subr.bf16.mxu1 %v861_v2  ;;  %s716_s29 = sshll.u32 %s1025_s22, 2  ;;  %v863_v4 = vld [vmem:[%s1021_s3 + $0x28] sm:$0xff]   ;;  %v864_v8 = vld [vmem:[%s1021_s3 + $0x20] sm:$0xff]   ;;  %s718_s26 = sshll.u32 %s1025_s22, 3 }
   0xd   : > { %776 = vmatpush3.bf16.msra.mxu0 %v851_v0  ;;  %835 = vmatpush3.bf16.msra.mxu1 %v861_v2  ;;  %s933_s7 = scalar_lea.vmem %s1018_s0, %s716_s29  ;;  %v865_v11 = vld [vmem:[%s1021_s3 + $0x18] sm:$0xff]   ;;  %v866_v15 = vld [vmem:[%s1021_s3 + $0x10] sm:$0xff]   ;;  %v867_v16 = vld [vmem:[%s1021_s3 + $0x8] sm:$0xff]   ;;  %s982_s29 = scalar_lea.vmem %s1023_s5, %s718_s26 }
   0xe   : > { %777 = vmatprep.subr.bf16.mxu0 %v852_v1  ;;  %828 = vmatprep.subr.bf16.mxu1 %v862_v3  ;;  %v853_v5 = vld [vmem:[%s933_s7] sm:$0xff]   ;;  %v854_v6 = vld [vmem:[%s933_s7 + $0x8] sm:$0xff]   ;;  %v855_v7 = vld [vmem:[%s933_s7 + $0x10] sm:$0xff]  }
   0xf   : > { %779 = vmatprep.mubr.msk.bf16.mxu0 %vm308_vm0, %v853_v5  ;;  %v856_v9 = vld [vmem:[%s933_s7 + $0x18] sm:$0xff]   ;;  %v857_v10 = vld [vmem:[%s933_s7 + $0x20] sm:$0xff]   ;;  %v858_v12 = vld [vmem:[%s933_s7 + $0x28] sm:$0xff]  }
  0x10   : > { %v859_v13 = vld [vmem:[%s933_s7 + $0x30] sm:$0xff]   ;;  %v860_v14 = vld [vmem:[%s933_s7 + $0x38] sm:$0xff]   ;;  %v868_v17 = vld [vmem:[%s1021_s3] sm:$0xff]  }
  0x11   : > { %778 = vmatpush3.bf16.msra.mxu0 %v852_v1  ;;  %836 = vmatpush3.bf16.msra.mxu1 %v862_v3  ;;  %v719_v20 = vld [vmem:[%s1020_s2] ss:$0 sm:$0xff] }
  0x12   : > { %795 = vmatprep.subr.bf16.mxu0 %v861_v2  ;;  %829 = vmatprep.subr.bf16.mxu1 %v863_v4 }
  0x14   : > { %780 = vmatmul.mubr.msk.bf16.vlgmr.msra.gmra.mxu0 %vm308_vm0, %v854_v6 }
  0x15   : > { %783 = vmatprep.mubr.msk.bf16.mxu0 %vm308_vm0, %v855_v7  ;;  %796 = vmatpush3.bf16.msra.mxu0 %v861_v2 }
  0x16   : > { %797 = vmatprep.subr.bf16.mxu0 %v862_v3  ;;  %837 = vmatpush3.bf16.msra.mxu1 %v863_v4 }
  0x17   : > { %830 = vmatprep.subr.bf16.mxu1 %v864_v8 }
  0x19   : > { %798 = vmatpush3.bf16.msra.mxu0 %v862_v3 }
  0x1a   : > { %799 = vmatprep.subr.bf16.mxu0 %v863_v4  ;;  %838 = vmatpush3.bf16.msra.mxu1 %v864_v8 }
  0x1b   : > { %831 = vmatprep.subr.bf16.mxu1 %v865_v11 }
  0x1c   : > { %784 = vmatmul.mubr.msk.bf16.gmra.mxu0 %vm308_vm0, %v856_v9 }
  0x1d   : > { %787 = vmatprep.mubr.msk.bf16.mxu0 %vm308_vm0, %v857_v10  ;;  %800 = vmatpush3.bf16.msra.mxu0 %v863_v4 }
  0x1e   : > { %801 = vmatprep.subr.bf16.mxu0 %v864_v8  ;;  %839 = vmatpush3.bf16.msra.mxu1 %v865_v11 }
  0x1f   : > { %832 = vmatprep.subr.bf16.mxu1 %v866_v15 }
  0x21   : > { %802 = vmatpush3.bf16.msra.mxu0 %v864_v8 }
  0x22   : > { %803 = vmatprep.subr.bf16.mxu0 %v865_v11  ;;  %840 = vmatpush3.bf16.msra.mxu1 %v866_v15 }
  0x23   : > { %833 = vmatprep.subr.bf16.mxu1 %v867_v16 }
  0x24   : > { %788 = vmatmul.mubr.msk.bf16.gmra.mxu0 %vm308_vm0, %v858_v12 }
  0x25   : > { %791 = vmatprep.mubr.msk.bf16.mxu0 %vm308_vm0, %v859_v13  ;;  %804 = vmatpush3.bf16.msra.mxu0 %v865_v11  ;;  %v975_v11 = vld [vmem:[%s1022_s4] ss:$0 sm:$0xff] }
  0x26   : > { %805 = vmatprep.subr.bf16.mxu0 %v866_v15  ;;  %841 = vmatpush3.bf16.msra.mxu1 %v867_v16 }
  0x27   : > { %834 = vmatprep.subr.bf16.mxu1 %v868_v17 }
  0x29   : > { %806 = vmatpush3.bf16.msra.mxu0 %v866_v15 }
  0x2a   : > { %807 = vmatprep.subr.bf16.mxu0 %v867_v16  ;;  %842 = vmatpush3.bf16.msra.mxu1 %v868_v17 }
  0x2c   : > { %792 = vmatmul.mubr.msk.bf16.gmra.mxu0 %vm308_vm0, %v860_v14 }
  0x2d   : > { %808 = vmatpush3.bf16.msra.mxu0 %v867_v16 }
  0x2e   : > { %809 = vmatprep.subr.bf16.mxu0 %v868_v17 }
  0x31   : > { %810 = vmatpush3.bf16.msra.mxu0 %v868_v17 }
  0xd4   : > { %v781_v18 = vpop.f32.mrf.mxu0 }
  0xd5   : > { %v376_v24 = vadd.f32 %v781_v18, %v719_v20 }
  0xd6   : > { %v367_v19 = vpop.f32.mrf.mxu0 }
  0xd7   : > { %v368_v22 = vadd.f32 %v719_v20, %v367_v19  ;;  %v432_v31 = vmax.f32 %v376_v24, 0.0 }
  0xd8   : > { %v782_v21 = vpop.f32.mrf.mxu0 }
  0xd9   : > { %v379_v23 = vadd.f32 %v782_v21, %v719_v20  ;;  %v430_v29 = vmax.f32 %v368_v22, 0.0 }
  0xda   : > { %v370_v25 = vpop.f32.mrf.mxu0 }
  0xdb   : > { %v371_v26 = vadd.f32 %v719_v20, %v370_v25  ;;  %v433_v27 = vmax.f32 %v379_v23, 0.0 }
  0xdc   : > { %v785_v28 = vpop.f32.mrf.mxu0 }
  0xdd   : > { %v431_v30 = vmax.f32 %v371_v26, 0.0  ;;  %v447_v34 = vpack.c.bf16 %v433_v27, %v432_v31  ;;  %v392_v38 = vadd.f32 %v785_v28, %v719_v20 }
  0xde   : > { %v383_v32 = vpop.f32.mrf.mxu0 }
  0xdf   : > { %v446_v33 = vpack.c.bf16 %v431_v30, %v430_v29  ;;  %v384_v36 = vadd.f32 %v719_v20, %v383_v32  ;;  %v436_v45 = vmax.f32 %v392_v38, 0.0 }
  0xe0   : > { %v786_v35 = vpop.f32.mrf.mxu0 }
  0xe1   : > { %v395_v37 = vadd.f32 %v786_v35, %v719_v20  ;;  %811 = vmatprep.mubr.bf16.mxu0 %v446_v33  ;;  %v434_v43 = vmax.f32 %v384_v36, 0.0 }
  0xe2   : > { %v386_v39 = vpop.f32.mrf.mxu0  ;;  %812 = vmatmul.mubr.bf16.vlgmr.msra.gmra.mxu0 %v447_v34 }
  0xe3   : > { %v387_v40 = vadd.f32 %v719_v20, %v386_v39  ;;  %v437_v41 = vmax.f32 %v395_v37, 0.0 }
  0xe4   : > { %v789_v42 = vpop.f32.mrf.mxu0 }
  0xe5   : > { %v435_v44 = vmax.f32 %v387_v40, 0.0  ;;  %v449_v48 = vpack.c.bf16 %v437_v41, %v436_v45  ;;  %v408_v52 = vadd.f32 %v789_v42, %v719_v20 }
  0xe6   : > { %v399_v46 = vpop.f32.mrf.mxu0 }
  0xe7   : > { %v448_v47 = vpack.c.bf16 %v435_v44, %v434_v43  ;;  %v400_v50 = vadd.f32 %v719_v20, %v399_v46  ;;  %v440_v59 = vmax.f32 %v408_v52, 0.0 }
  0xe8   : > { %v790_v49 = vpop.f32.mrf.mxu0 }
  0xe9   : > { %v411_v51 = vadd.f32 %v790_v49, %v719_v20  ;;  %815 = vmatprep.mubr.bf16.mxu1 %v448_v47  ;;  %v438_v57 = vmax.f32 %v400_v50, 0.0 }
  0xea   : > { %v402_v53 = vpop.f32.mrf.mxu0  ;;  %816 = vmatmul.mubr.bf16.vlgmr.msra.gmra.mxu1 %v449_v48 }
  0xeb   : > { %v403_v54 = vadd.f32 %v719_v20, %v402_v53  ;;  %v441_v55 = vmax.f32 %v411_v51, 0.0 }
  0xec   : > { %v793_v56 = vpop.f32.mrf.mxu0 }
  0xed   : > { %v439_v58 = vmax.f32 %v403_v54, 0.0  ;;  %v451_v62 = vpack.c.bf16 %v441_v55, %v440_v59  ;;  %v424_v2 = vadd.f32 %v793_v56, %v719_v20 }
  0xee   : > { %v415_v60 = vpop.f32.mrf.mxu0 }
  0xef   : > { %v450_v61 = vpack.c.bf16 %v439_v58, %v438_v57  ;;  %v416_v0 = vadd.f32 %v719_v20, %v415_v60  ;;  %v444_v8 = vmax.f32 %v424_v2, 0.0 }
  0xf0   : > { %v794_v63 = vpop.f32.mrf.mxu0 }
  0xf1   : > { %v427_v1 = vadd.f32 %v794_v63, %v719_v20  ;;  %819 = vmatprep.mubr.bf16.mxu1 %v450_v61  ;;  %v442_v6 = vmax.f32 %v416_v0, 0.0 }
  0xf2   : > { %v418_v3 = vpop.f32.mrf.mxu0  ;;  %820 = vmatmul.mubr.bf16.gmra.mxu1 %v451_v62 }
  0xf3   : > { %v419_v4 = vadd.f32 %v719_v20, %v418_v3  ;;  %v445_v5 = vmax.f32 %v427_v1, 0.0 }
  0xf5   : > { %v443_v7 = vmax.f32 %v419_v4, 0.0  ;;  %v453_v10 = vpack.c.bf16 %v445_v5, %v444_v8 }
  0xf7   : > { %v452_v9 = vpack.c.bf16 %v443_v7, %v442_v6 }
  0xf9   : > { %823 = vmatprep.mubr.bf16.mxu1 %v452_v9 }
  0xfa   : > { %824 = vmatmul.mubr.bf16.gmra.mxu1 %v453_v10 }
 0x1a2   : > { %v813_v12 = vpop.f32.mrf.mxu0 }
 0x1a3   : > { %v568_v13 = vadd.f32 %v813_v12, %v975_v11 }
 0x1a4   : > { %v559_v14 = vpop.f32.mrf.mxu0 }
 0x1a5   : > { %v624_v15 = vmax.f32 %v568_v13, 0.0  ;;  %v560_v16 = vadd.f32 %v975_v11, %v559_v14 }
 0x1a6   : > { %v814_v17 = vpop.f32.mrf.mxu0 }
 0x1a7   : > { %640 = vst [vmem:[%s982_s29 + $0x10] sm:$0xff] %v624_v15  ;;  %v622_v18 = vmax.f32 %v560_v16, 0.0  ;;  %v571_v19 = vadd.f32 %v814_v17, %v975_v11 }
 0x1a8   : > { %v562_v20 = vpop.f32.mrf.mxu0 }
 0x1a9   : > { %638 = vst [vmem:[%s982_s29] sm:$0xff] %v622_v18  ;;  %v625_v21 = vmax.f32 %v571_v19, 0.0  ;;  %v563_v22 = vadd.f32 %v975_v11, %v562_v20 }
 0x1aa   : > { %v817_v23 = vpop.f32.mrf.mxu1 }
 0x1ab   : > { %641 = vst [vmem:[%s982_s29 + $0x18] sm:$0xff] %v625_v21  ;;  %v623_v24 = vmax.f32 %v563_v22, 0.0  ;;  %v584_v25 = vadd.f32 %v817_v23, %v975_v11 }
 0x1ac   : > { %v575_v26 = vpop.f32.mrf.mxu1 }
 0x1ad   : > { %639 = vst [vmem:[%s982_s29 + $0x8] sm:$0xff] %v623_v24  ;;  %v628_v27 = vmax.f32 %v584_v25, 0.0  ;;  %v576_v28 = vadd.f32 %v975_v11, %v575_v26 }
 0x1ae   : > { %v818_v29 = vpop.f32.mrf.mxu1 }
 0x1af   : > { %644 = vst [vmem:[%s982_s29 + $0x30] sm:$0xff] %v628_v27  ;;  %v626_v30 = vmax.f32 %v576_v28, 0.0  ;;  %v587_v31 = vadd.f32 %v818_v29, %v975_v11 }
 0x1b0   : > { %v578_v32 = vpop.f32.mrf.mxu1 }
 0x1b1   : > { %642 = vst [vmem:[%s982_s29 + $0x20] sm:$0xff] %v626_v30  ;;  %v629_v33 = vmax.f32 %v587_v31, 0.0  ;;  %v579_v34 = vadd.f32 %v975_v11, %v578_v32 }
 0x1b2   : > { %v821_v35 = vpop.f32.mrf.mxu1 }
 0x1b3   : > { %645 = vst [vmem:[%s982_s29 + $0x38] sm:$0xff] %v629_v33  ;;  %v627_v36 = vmax.f32 %v579_v34, 0.0  ;;  %v600_v37 = vadd.f32 %v821_v35, %v975_v11 }
 0x1b4   : > { %v591_v38 = vpop.f32.mrf.mxu1 }
 0x1b5   : > { %643 = vst [vmem:[%s982_s29 + $0x28] sm:$0xff] %v627_v36  ;;  %v632_v39 = vmax.f32 %v600_v37, 0.0  ;;  %v592_v40 = vadd.f32 %v975_v11, %v591_v38 }
 0x1b6   : > { %v822_v41 = vpop.f32.mrf.mxu1 }
 0x1b7   : > { %648 = vst [vmem:[%s982_s29 + $0x50] sm:$0xff] %v632_v39  ;;  %v630_v42 = vmax.f32 %v592_v40, 0.0  ;;  %v603_v43 = vadd.f32 %v822_v41, %v975_v11 }
 0x1b8   : > { %v594_v44 = vpop.f32.mrf.mxu1 }
 0x1b9   : > { %646 = vst [vmem:[%s982_s29 + $0x40] sm:$0xff] %v630_v42  ;;  %v633_v45 = vmax.f32 %v603_v43, 0.0  ;;  %v595_v46 = vadd.f32 %v975_v11, %v594_v44 }
 0x1ba   : > { %v825_v47 = vpop.f32.mrf.mxu1 }
 0x1bb   : > { %649 = vst [vmem:[%s982_s29 + $0x58] sm:$0xff] %v633_v45  ;;  %v631_v48 = vmax.f32 %v595_v46, 0.0  ;;  %v616_v49 = vadd.f32 %v825_v47, %v975_v11 }
 0x1bc   : > { %v607_v50 = vpop.f32.mrf.mxu1 }
 0x1bd   : > { %647 = vst [vmem:[%s982_s29 + $0x48] sm:$0xff] %v631_v48  ;;  %v636_v51 = vmax.f32 %v616_v49, 0.0  ;;  %v608_v52 = vadd.f32 %v975_v11, %v607_v50 }
 0x1be   : > { %v826_v53 = vpop.f32.mrf.mxu1 }
 0x1bf   : > { %652 = vst [vmem:[%s982_s29 + $0x70] sm:$0xff] %v636_v51  ;;  %v634_v54 = vmax.f32 %v608_v52, 0.0  ;;  %v619_v55 = vadd.f32 %v826_v53, %v975_v11 }
 0x1c0   : > { %v610_v56 = vpop.f32.mrf.mxu1 }
 0x1c1   : > { %650 = vst [vmem:[%s982_s29 + $0x60] sm:$0xff] %v634_v54  ;;  %v637_v57 = vmax.f32 %v619_v55, 0.0  ;;  %v611_v58 = vadd.f32 %v975_v11, %v610_v56 }
 0x1c3   : > { %653 = vst [vmem:[%s982_s29 + $0x78] sm:$0xff] %v637_v57  ;;  %v635_v59 = vmax.f32 %v611_v58, 0.0 }
 0x1c5   : > { %651 = vst [vmem:[%s982_s29 + $0x68] sm:$0xff] %v635_v59 }
 0x1c6 PF: > { %s15_s18 = sadd.s32 1, %s875_s18  }
 0x1c7   : > { %p12_p4 = scmp.ge.s32.totalorder %s15_s18, 4  }
 0x1c9   :  { %14 = sbr.rel (!%p12_p4) target bundleno = 1 (0x1), region = 70 }

</bundles_post_ra>
